<compile_context>
chip_gen: v7x
topology: tpu7x:2x2x1
jax: 0.10.0
libtpu: 0.0.40
codegen_flags: <defaults>
</compile_context>

<pallas_src>
import functools

import jax
import jax.numpy as jnp
from jax import lax
from jax.experimental import pallas as pl
from jax.experimental.pallas import tpu as pltpu


def _vmem_limit_bytes():
    """Generation-aware scoped-VMEM request: ~5/8 of physical, capped at 64 MiB
    (-> ~40 MiB on v7x's 64 MiB/TC, 64 MiB on v5e/v6e's 128 MiB)."""
    cap = 128 * 1024 * 1024
    try:
        cap = int(pltpu.get_tpu_info().vmem_capacity_bytes)
    except Exception:  # non-TPU / older runtime: fall back to 128 MiB assumption
        pass
    return min(64 * 1024 * 1024, (cap * 5) // 8)


# ---------------------------------------------------------------------------
# Shared kernel pieces
# ---------------------------------------------------------------------------

def _affine(x_ref, w_ref, b_ref):
    """y = x @ W^T + b on the MXU, f32 accumulation, no W^T materialization."""
    y = lax.dot_general(
        x_ref[...], w_ref[...],
        dimension_numbers=(((1,), (1,)), ((), ())),
        preferred_element_type=jnp.float32)
    return y + b_ref[...].astype(jnp.float32)


def _accumulate_stats(y, row_start, nrows, is_last, ragged, sum_ref, sq_ref):
    """Accumulate per-channel sum / sum-of-squares into (8, C) f32 scratch.

    The (tm, C) tile is reshaped to (tm//8, 8, C) and reduced over the leading
    axis with plain VPU adds; the single 8->1 cross-sublane reduce happens only
    once, in _finalize_stats.  Out-of-range rows of the ragged last tile are
    masked, and the mask only executes on the last grid step."""
    tm = y.shape[0]

    def add(yv):
        y3 = yv.reshape(tm // 8, 8, yv.shape[-1])
        sum_ref[...] += jnp.sum(y3, axis=0)
        sq_ref[...] += jnp.sum(y3 * y3, axis=0)

    if ragged:
        @pl.when(jnp.logical_not(is_last))
        def _():
            add(y)

        @pl.when(is_last)
        def _():
            row = lax.broadcasted_iota(jnp.int32, (tm, 1), 0) + row_start
            add(jnp.where(row < nrows, y, 0.0))
    else:
        add(y)


def _finalize_stats(nrows, momentum, sum_ref, sq_ref, rm_ref, rv_ref,
                    nm_ref, nv_ref):
    s = jnp.sum(sum_ref[...], axis=0, keepdims=True)   # (1, C): single cross-sublane reduce
    q = jnp.sum(sq_ref[...], axis=0, keepdims=True)
    mean = s / nrows
    # Unbiased variance (torch.var default, ddof=1).  nrows == 1 -> 0 divisor
    # (NaN/inf), matching torch.  f32 sum/sumsq can cancel for large per-channel
    # means; a shifted / Welford-style combine would be more robust if needed.
    var = (q - s * mean) / (nrows - 1)
    nm_ref[...] = mean * (1.0 - momentum) + rm_ref[...] * momentum
    nv_ref[...] = var * (1.0 - momentum) + rv_ref[...] * momentum


# ---------------------------------------------------------------------------
# Kernels
# ---------------------------------------------------------------------------

def _fused_kernel(nrows, momentum, eps, ragged,
                  x_ref, w_ref, b_ref, rm_ref, rv_ref,
                  out_ref, nm_ref, nv_ref,
                  y_vmem, sum_ref, sq_ref):
    """Single-call path: pass 0 = affine + stats (y kept in VMEM), pass 1 = normalize."""
    p = pl.program_id(0)
    i = pl.program_id(1)
    last = pl.num_programs(1) - 1
    tm = out_ref.shape[0]

    @pl.when(p == 0)
    def _stats_pass():
        @pl.when(i == 0)
        def _():
            sum_ref[...] = jnp.zeros_like(sum_ref)
            sq_ref[...] = jnp.zeros_like(sq_ref)

        y = _affine(x_ref, w_ref, b_ref)              # (tm, C) f32
        y_vmem[i] = y                                 # keep y resident in VMEM (no HBM round-trip)
        _accumulate_stats(y, i * tm, nrows, i == last, ragged, sum_ref, sq_ref)

        @pl.when(i == last)
        def _():
            _finalize_stats(nrows, momentum, sum_ref, sq_ref,
                            rm_ref, rv_ref, nm_ref, nv_ref)

    @pl.when(p == 1)
    def _norm_pass():
        # new_mean / new_var live in the constant-index, VMEM-resident output
        # buffers written during pass 0.  Tiny (1, C) exact divide, then a VPU
        # multiply over the tile.
        inv = 1.0 / (nv_ref[...] + eps)
        out_ref[...] = ((y_vmem[i] - nm_ref[...]) * inv).astype(out_ref.dtype)


def _stats_kernel(nrows, momentum, ragged,
                  x_ref, w_ref, b_ref, rm_ref, rv_ref,
                  nm_ref, nv_ref,
                  sum_ref, sq_ref):
    """Two-phase path, phase 1: affine + batch statistics only (no y store)."""
    i = pl.program_id(0)
    last = pl.num_programs(0) - 1
    tm = x_ref.shape[0]

    @pl.when(i == 0)
    def _():
        sum_ref[...] = jnp.zeros_like(sum_ref)
        sq_ref[...] = jnp.zeros_like(sq_ref)

    y = _affine(x_ref, w_ref, b_ref)
    _accumulate_stats(y, i * tm, nrows, i == last, ragged, sum_ref, sq_ref)

    @pl.when(i == last)
    def _():
        _finalize_stats(nrows, momentum, sum_ref, sq_ref,
                        rm_ref, rv_ref, nm_ref, nv_ref)


def _normalize_kernel(eps, x_ref, w_ref, b_ref, mean_ref, var_ref, out_ref):
    """Two-phase path, phase 2: recompute the (cheap) matmul, then normalize."""
    y = _affine(x_ref, w_ref, b_ref)
    inv = 1.0 / (var_ref[...] + eps)
    out_ref[...] = ((y - mean_ref[...]) * inv).astype(out_ref.dtype)


# ---------------------------------------------------------------------------
# Wrapper
# ---------------------------------------------------------------------------

def last_batch_norm(x, weight, bias, running_mean, running_var, *,
                    momentum=0.99, eps=1e-4, block_rows=None,
                    force_two_phase=False):
    """Training-mode LastBatchNorm forward.

    x: (..., C).  weight: (C, C) torch nn.Linear layout (out, in).  bias: (C,).
    Returns (out with x.shape, new_mean (C,) f32, new_var (C,) f32).
    """
    orig_shape = x.shape
    c = orig_shape[-1]
    x_flat = x.reshape(-1, c)
    m = x_flat.shape[0]

    # Matching dtypes put bf16 activations on the native bf16 MXU path.
    weight = weight.astype(x.dtype)
    b2 = bias.astype(jnp.float32).reshape(1, c)
    rm2 = running_mean.astype(jnp.float32).reshape(1, c)
    rv2 = running_var.astype(jnp.float32).reshape(1, c)

    x_isz = jnp.dtype(x.dtype).itemsize
    w_isz = jnp.dtype(weight.dtype).itemsize
    vmem_limit = _vmem_limit_bytes()
    budget = (vmem_limit * 3) // 5                    # headroom for compiler/internal scratch
    # Resident, double-buffered weight block + small vectors / accumulators.
    fixed = 2 * c * c * w_isz + 8 * c * 4 * 4

    m_pad = ((m + 7) // 8) * 8
    if block_rows is None:
        per_row = c * (4 * x_isz + 4)                 # x 2-buf + out 2-buf + f32 y temp
        tm = max(budget - fixed, 1 << 20) // max(per_row, 1)
        tm = max(8, min(8192, int(tm)))               # raised cap: fewer grid steps at small C
    else:
        tm = max(8, int(block_rows))
    tm = max(8, min((tm // 8) * 8, m_pad))
    grid_m = pl.cdiv(m, tm)
    ragged = (m % tm) != 0

    # Fused path when the whole f32 y slab (plus tiles + weight) fits in VMEM.
    y_slab_bytes = grid_m * tm * c * 4
    tile_bytes = tm * c * (4 * x_isz + 4)
    use_fused = (not force_two_phase) and (y_slab_bytes + tile_bytes + fixed <= budget)

    if use_fused:
        x_spec = pl.BlockSpec((tm, c), lambda p, i: ((1 - p) * i, 0))   # pass 0 streams, pass 1 parks
        out_spec = pl.BlockSpec((tm, c), lambda p, i: (p * i, 0))       # written only in pass 1
        vec_spec = pl.BlockSpec((1, c), lambda p, i: (0, 0))
        w_spec = pl.BlockSpec((c, c), lambda p, i: (0, 0))              # resident across the grid

        kernel = functools.partial(_fused_kernel, m, momentum, eps, ragged)
        out, new_mean, new_var = pl.pallas_call(
            kernel,
            out_shape=(jax.ShapeDtypeStruct((m, c), x.dtype),
                       jax.ShapeDtypeStruct((1, c), jnp.float32),
                       jax.ShapeDtypeStruct((1, c), jnp.float32)),
            grid_spec=pltpu.PrefetchScalarGridSpec(
                num_scalar_prefetch=0,
                grid=(2, grid_m),
                in_specs=[x_spec, w_spec, vec_spec, vec_spec, vec_spec],
                out_specs=(out_spec, vec_spec, vec_spec),
                scratch_shapes=[pltpu.VMEM((grid_m, tm, c), jnp.float32),
                                pltpu.VMEM((8, c), jnp.float32),
                                pltpu.VMEM((8, c), jnp.float32)]),
            compiler_params=pltpu.CompilerParams(
                dimension_semantics=("arbitrary", "arbitrary"),
                vmem_limit_bytes=vmem_limit),
            cost_estimate=pl.CostEstimate(
                flops=2 * m * c * c + 6 * m * c,
                transcendentals=0,
                bytes_accessed=2 * m * c * x_isz + c * c * w_isz),
        )(x_flat, weight, b2, rm2, rv2)
        return out.reshape(orig_shape), new_mean.reshape(c), new_var.reshape(c)

    # -------- Two-phase recompute path --------------------------------------
    row_spec = pl.BlockSpec((tm, c), lambda i: (i, 0))
    vec_spec = pl.BlockSpec((1, c), lambda i: (0, 0))
    w_spec = pl.BlockSpec((c, c), lambda i: (0, 0))

    stats = functools.partial(_stats_kernel, m, momentum, ragged)
    new_mean, new_var = pl.pallas_call(
        stats,
        out_shape=(jax.ShapeDtypeStruct((1, c), jnp.float32),
                   jax.ShapeDtypeStruct((1, c), jnp.float32)),
        grid_spec=pltpu.PrefetchScalarGridSpec(
            num_scalar_prefetch=0,
            grid=(grid_m,),
            in_specs=[row_spec, w_spec, vec_spec, vec_spec, vec_spec],
            out_specs=(vec_spec, vec_spec),
            scratch_shapes=[pltpu.VMEM((8, c), jnp.float32),
                            pltpu.VMEM((8, c), jnp.float32)]),
        compiler_params=pltpu.CompilerParams(
            dimension_semantics=("arbitrary",),
            vmem_limit_bytes=vmem_limit),
        cost_estimate=pl.CostEstimate(
            flops=2 * m * c * c + 4 * m * c,
            transcendentals=0,
            bytes_accessed=m * c * x_isz + c * c * w_isz),
    )(x_flat, weight, b2, rm2, rv2)

    norm = functools.partial(_normalize_kernel, eps)
    out = pl.pallas_call(
        norm,
        out_shape=jax.ShapeDtypeStruct((m, c), x.dtype),
        grid_spec=pltpu.PrefetchScalarGridSpec(
            num_scalar_prefetch=0,
            grid=(grid_m,),
            in_specs=[row_spec, w_spec, vec_spec, vec_spec, vec_spec],
            out_specs=row_spec),
        compiler_params=pltpu.CompilerParams(
            dimension_semantics=("parallel",),        # megacore-shardable on v7x
            vmem_limit_bytes=vmem_limit),
        cost_estimate=pl.CostEstimate(
            flops=2 * m * c * c + 3 * m * c,
            transcendentals=0,
            bytes_accessed=2 * m * c * x_isz + c * c * w_isz),
    )(x_flat, weight, b2, new_mean, new_var)

    return out.reshape(orig_shape), new_mean.reshape(c), new_var.reshape(c)


# ---------------------------------------------------------------------------
# Reference + self-test
# ---------------------------------------------------------------------------

def _reference(x, weight, bias, running_mean, running_var, momentum=0.99, eps=1e-4):
    y = jnp.einsum("...i,oi->...o", x, weight) + bias
    y_flat = y.reshape(-1, y.shape[-1])
    mean = jnp.mean(y_flat, axis=0)
    var = jnp.var(y_flat, axis=0, ddof=1)
    new_mean = mean * (1 - momentum) + running_mean * momentum
    new_var = var * (1 - momentum) + running_var * momentum
    out = (y - new_mean) / (new_var + eps)
    return out, new_mean, new_var


def _check(x, weight, bias, rm, rv, momentum, eps, block_rows, force_two_phase):
    out, nm, nv = last_batch_norm(
        x, weight, bias, rm, rv, momentum=momentum, eps=eps,
        block_rows=block_rows, force_two_phase=force_two_phase)
    jax.block_until_ready((out, nm, nv))
    r_out, r_m, r_v = _reference(x, weight, bias, rm, rv, momentum, eps)
    assert jnp.allclose(out, r_out, atol=1e-4, rtol=1e-4), "output mismatch"
    assert jnp.allclose(nm, r_m, atol=1e-5, rtol=1e-5), "new_mean mismatch"
    assert jnp.allclose(nv, r_v, atol=1e-5, rtol=1e-5), "new_var mismatch"


if __name__ == "__main__":
    key = jax.random.PRNGKey(0)
    channels = 32
    momentum, eps = 0.99, 1e-4

    kx1, kx2, kw, kb = jax.random.split(key, 4)

    # Deterministic nn.Linear-style init: U(-1/sqrt(in), 1/sqrt(in)).
    bound = 1.0 / (channels ** 0.5)
    weight = jax.random.uniform(kw, (channels, channels), jnp.float32, -bound, bound)
    bias = jax.random.uniform(kb, (channels,), jnp.float32, -bound, bound)
    running_mean = jnp.zeros((channels,), jnp.float32)
    running_var = jnp.ones((channels,), jnp.float32)

    x1 = jax.random.normal(kx1, (2, 8, channels), dtype=jnp.float32)   # M=16
    x2 = jax.random.normal(kx2, (3, 5, channels), dtype=jnp.float32)   # M=15 (ragged)

    # Case 1: even tiling, fused (y-in-VMEM) path, 2 row tiles.
    _check(x1, weight, bias, running_mean, running_var, momentum, eps,
           block_rows=8, force_two_phase=False)
    # Case 2: even tiling, two-phase recompute path.
    _check(x1, weight, bias, running_mean, running_var, momentum, eps,
           block_rows=8, force_two_phase=True)
    # Case 3: ragged last tile, two-phase recompute path (masked tail).
    _check(x2, weight, bias, running_mean, running_var, momentum, eps,
           block_rows=8, force_two_phase=True)
    # Case 4: auto tile size, fused path, single ragged tile.
    _check(x2, weight, bias, running_mean, running_var, momentum, eps,
           block_rows=None, force_two_phase=False)

    print("KERNEL_OK")
</pallas_src>

<mosaic_0001>
module attributes {stable_mosaic.version = 11 : i64} {
  func.func @_fused_kernel(%arg0: i32, %arg1: i32, %arg2: memref<8x32xf32, #tpu.memory_space<vmem>>, %arg3: memref<32x32xf32, #tpu.memory_space<vmem>>, %arg4: memref<1x32xf32, #tpu.memory_space<vmem>>, %arg5: memref<1x32xf32, #tpu.memory_space<vmem>>, %arg6: memref<1x32xf32, #tpu.memory_space<vmem>>, %arg7: memref<8x32xf32, #tpu.memory_space<vmem>>, %arg8: memref<1x32xf32, #tpu.memory_space<vmem>>, %arg9: memref<1x32xf32, #tpu.memory_space<vmem>>, %arg10: memref<2x8x32xf32, #tpu.memory_space<vmem>>, %arg11: memref<8x32xf32, #tpu.memory_space<vmem>>, %arg12: memref<8x32xf32, #tpu.memory_space<vmem>>) attributes {dimension_semantics = [#tpu.dimension_semantics<arbitrary>, #tpu.dimension_semantics<arbitrary>], iteration_bounds = array<i64: 2, 2>, scalar_prefetch = 0 : i64, scratch_operands = 3 : i64, tpu.core_type = #tpu.core_type<tc>, window_params = [{transform_indices = @transform_0, window_bounds = array<i64: 8, 32>}, {pipeline_mode = #tpu.pipeline_mode<synchronous>, transform_indices = @transform_1, window_bounds = array<i64: 32, 32>}, {pipeline_mode = #tpu.pipeline_mode<synchronous>, transform_indices = @transform_2, window_bounds = array<i64: 1, 32>}, {pipeline_mode = #tpu.pipeline_mode<synchronous>, transform_indices = @transform_3, window_bounds = array<i64: 1, 32>}, {pipeline_mode = #tpu.pipeline_mode<synchronous>, transform_indices = @transform_4, window_bounds = array<i64: 1, 32>}, {transform_indices = @transform_5, window_bounds = array<i64: 8, 32>}, {pipeline_mode = #tpu.pipeline_mode<synchronous>, transform_indices = @transform_6, window_bounds = array<i64: 1, 32>}, {pipeline_mode = #tpu.pipeline_mode<synchronous>, transform_indices = @transform_7, window_bounds = array<i64: 1, 32>}]} {
    %c0_i32 = arith.constant 0 : i32
    %0 = arith.cmpi eq, %arg0, %c0_i32 : i32
    %1 = arith.extui %0 : i1 to i32
    %c0_i32_0 = arith.constant 0 : i32
    %2 = arith.cmpi ne, %1, %c0_i32_0 : i32
    scf.if %2 {
      %c0_i32_2 = arith.constant 0 : i32
      %6 = arith.cmpi eq, %arg1, %c0_i32_2 : i32
      %7 = arith.extui %6 : i1 to i32
      %c0_i32_3 = arith.constant 0 : i32
      %8 = arith.cmpi ne, %7, %c0_i32_3 : i32
      scf.if %8 {
        %cst_23 = arith.constant 0.000000e+00 : f32
        %32 = vector.broadcast %cst_23 : f32 to vector<8x32xf32>
        %c0_24 = arith.constant 0 : index
        %c0_25 = arith.constant 0 : index
        %33 = vector.load %arg11[%c0_24, %c0_25] : memref<8x32xf32, #tpu.memory_space<vmem>>, vector<8x32xf32>
        tpu.vector_store %arg11[%c0_24, %c0_25], %32 {strides = array<i32>} : memref<8x32xf32, #tpu.memory_space<vmem>>, vector<8x32xf32>,
        %cst_26 = arith.constant 0.000000e+00 : f32
        %34 = vector.broadcast %cst_26 : f32 to vector<8x32xf32>
        %c0_27 = arith.constant 0 : index
        %c0_28 = arith.constant 0 : index
        %35 = vector.load %arg12[%c0_27, %c0_28] : memref<8x32xf32, #tpu.memory_space<vmem>>, vector<8x32xf32>
        tpu.vector_store %arg12[%c0_27, %c0_28], %34 {strides = array<i32>} : memref<8x32xf32, #tpu.memory_space<vmem>>, vector<8x32xf32>,
      } else {
      }
      %c0 = arith.constant 0 : index
      %c0_4 = arith.constant 0 : index
      %9 = vector.load %arg2[%c0, %c0_4] : memref<8x32xf32, #tpu.memory_space<vmem>>, vector<8x32xf32>
      %c0_5 = arith.constant 0 : index
      %c0_6 = arith.constant 0 : index
      %10 = vector.load %arg3[%c0_5, %c0_6] : memref<32x32xf32, #tpu.memory_space<vmem>>, vector<32x32xf32>
      %cst = arith.constant dense<0.000000e+00> : vector<8x32xf32>
      %11 = tpu.matmul %9, %10, %cst {dimension_numbers = #tpu.dot_dimension_numbers<[1], [1], [0], [0], [0, 0, 1, 0], [], []>} : vector<8x32xf32>, vector<32x32xf32>, vector<8x32xf32> -> vector<8x32xf32>
      %c0_7 = arith.constant 0 : index
      %c0_8 = arith.constant 0 : index
      %12 = vector.load %arg4[%c0_7, %c0_8] : memref<1x32xf32, #tpu.memory_space<vmem>>, vector<1x32xf32>
      %13 = vector.broadcast %12 : vector<1x32xf32> to vector<8x32xf32>
      %14 = arith.addf %11, %13 : vector<8x32xf32>
      %15 = arith.index_cast %arg1 : i32 to index
      %c0_9 = arith.constant 0 : index
      %c0_10 = arith.constant 0 : index
      %16 = vector.load %arg10[%15, %c0_9, %c0_10] : memref<2x8x32xf32, #tpu.memory_space<vmem>>, vector<1x8x32xf32>
      %17 = vector.shape_cast %16 : vector<1x8x32xf32> to vector<8x32xf32>
      %18 = vector.shape_cast %14 : vector<8x32xf32> to vector<1x8x32xf32>
      tpu.vector_store %arg10[%15, %c0_9, %c0_10], %18 {strides = array<i32>} : memref<2x8x32xf32, #tpu.memory_space<vmem>>, vector<1x8x32xf32>,
      %19 = vector.shape_cast %14 : vector<8x32xf32> to vector<1x8x32xf32>
      %c0_11 = arith.constant 0 : index
      %c0_12 = arith.constant 0 : index
      %20 = vector.load %arg11[%c0_11, %c0_12] : memref<8x32xf32, #tpu.memory_space<vmem>>, vector<8x32xf32>
      %cst_13 = arith.constant dense<0.000000e+00> : vector<8x32xf32>
      %21 = vector.multi_reduction <add>, %19, %cst_13 [0] : vector<1x8x32xf32> to vector<8x32xf32>
      %22 = arith.addf %20, %21 : vector<8x32xf32>
      %c0_14 = arith.constant 0 : index
      %c0_15 = arith.constant 0 : index
      %23 = vector.load %arg11[%c0_14, %c0_15] : memref<8x32xf32, #tpu.memory_space<vmem>>, vector<8x32xf32>
      tpu.vector_store %arg11[%c0_14, %c0_15], %22 {strides = array<i32>} : memref<8x32xf32, #tpu.memory_space<vmem>>, vector<8x32xf32>,
      %c0_16 = arith.constant 0 : index
      %c0_17 = arith.constant 0 : index
      %24 = vector.load %arg12[%c0_16, %c0_17] : memref<8x32xf32, #tpu.memory_space<vmem>>, vector<8x32xf32>
      %25 = arith.mulf %19, %19 : vector<1x8x32xf32>
      %cst_18 = arith.constant dense<0.000000e+00> : vector<8x32xf32>
      %26 = vector.multi_reduction <add>, %25, %cst_18 [0] : vector<1x8x32xf32> to vector<8x32xf32>
      %27 = arith.addf %24, %26 : vector<8x32xf32>
      %c0_19 = arith.constant 0 : index
      %c0_20 = arith.constant 0 : index
      %28 = vector.load %arg12[%c0_19, %c0_20] : memref<8x32xf32, #tpu.memory_space<vmem>>, vector<8x32xf32>
      tpu.vector_store %arg12[%c0_19, %c0_20], %27 {strides = array<i32>} : memref<8x32xf32, #tpu.memory_space<vmem>>, vector<8x32xf32>,
      %c1_i32_21 = arith.constant 1 : i32
      %29 = arith.cmpi eq, %arg1, %c1_i32_21 : i32
      %30 = arith.extui %29 : i1 to i32
      %c0_i32_22 = arith.constant 0 : i32
      %31 = arith.cmpi ne, %30, %c0_i32_22 : i32
      scf.if %31 {
        %c0_23 = arith.constant 0 : index
        %c0_24 = arith.constant 0 : index
        %32 = vector.load %arg11[%c0_23, %c0_24] : memref<8x32xf32, #tpu.memory_space<vmem>>, vector<8x32xf32>
        %cst_25 = arith.constant dense<0.000000e+00> : vector<32xf32>
        %33 = vector.multi_reduction <add>, %32, %cst_25 [0] : vector<8x32xf32> to vector<32xf32>
        %34 = vector.shape_cast %33 : vector<32xf32> to vector<1x32xf32>
        %c0_26 = arith.constant 0 : index
        %c0_27 = arith.constant 0 : index
        %35 = vector.load %arg12[%c0_26, %c0_27] : memref<8x32xf32, #tpu.memory_space<vmem>>, vector<8x32xf32>
        %cst_28 = arith.constant dense<0.000000e+00> : vector<32xf32>
        %36 = vector.multi_reduction <add>, %35, %cst_28 [0] : vector<8x32xf32> to vector<32xf32>
        %37 = vector.shape_cast %36 : vector<32xf32> to vector<1x32xf32>
        %cst_29 = arith.constant 1.600000e+01 : f32
        %38 = vector.broadcast %cst_29 : f32 to vector<1x32xf32>
        %39 = arith.divf %34, %38 : vector<1x32xf32>
        %40 = arith.mulf %34, %39 : vector<1x32xf32>
        %41 = arith.subf %37, %40 : vector<1x32xf32>
        %cst_30 = arith.constant 1.500000e+01 : f32
        %42 = vector.broadcast %cst_30 : f32 to vector<1x32xf32>
        %43 = arith.divf %41, %42 : vector<1x32xf32>
        %cst_31 = arith.constant 0.00999999977 : f32
        %44 = vector.broadcast %cst_31 : f32 to vector<1x32xf32>
        %45 = arith.mulf %39, %44 : vector<1x32xf32>
        %c0_32 = arith.constant 0 : index
        %c0_33 = arith.constant 0 : index
        %46 = vector.load %arg5[%c0_32, %c0_33] : memref<1x32xf32, #tpu.memory_space<vmem>>, vector<1x32xf32>
        %cst_34 = arith.constant 9.900000e-01 : f32
        %47 = vector.broadcast %cst_34 : f32 to vector<1x32xf32>
        %48 = arith.mulf %46, %47 : vector<1x32xf32>
        %49 = arith.addf %45, %48 : vector<1x32xf32>
        %c0_35 = arith.constant 0 : index
        %c0_36 = arith.constant 0 : index
        %50 = vector.load %arg8[%c0_35, %c0_36] : memref<1x32xf32, #tpu.memory_space<vmem>>, vector<1x32xf32>
        tpu.vector_store %arg8[%c0_35, %c0_36], %49 {strides = array<i32>} : memref<1x32xf32, #tpu.memory_space<vmem>>, vector<1x32xf32>,
        %cst_37 = arith.constant 0.00999999977 : f32
        %51 = vector.broadcast %cst_37 : f32 to vector<1x32xf32>
        %52 = arith.mulf %43, %51 : vector<1x32xf32>
        %c0_38 = arith.constant 0 : index
        %c0_39 = arith.constant 0 : index
        %53 = vector.load %arg6[%c0_38, %c0_39] : memref<1x32xf32, #tpu.memory_space<vmem>>, vector<1x32xf32>
        %cst_40 = arith.constant 9.900000e-01 : f32
        %54 = vector.broadcast %cst_40 : f32 to vector<1x32xf32>
        %55 = arith.mulf %53, %54 : vector<1x32xf32>
        %56 = arith.addf %52, %55 : vector<1x32xf32>
        %c0_41 = arith.constant 0 : index
        %c0_42 = arith.constant 0 : index
        %57 = vector.load %arg9[%c0_41, %c0_42] : memref<1x32xf32, #tpu.memory_space<vmem>>, vector<1x32xf32>
        tpu.vector_store %arg9[%c0_41, %c0_42], %56 {strides = array<i32>} : memref<1x32xf32, #tpu.memory_space<vmem>>, vector<1x32xf32>,
      } else {
      }
    } else {
    }
    %c1_i32 = arith.constant 1 : i32
    %3 = arith.cmpi eq, %arg0, %c1_i32 : i32
    %4 = arith.extui %3 : i1 to i32
    %c0_i32_1 = arith.constant 0 : i32
    %5 = arith.cmpi ne, %4, %c0_i32_1 : i32
    scf.if %5 {
      %c0 = arith.constant 0 : index
      %c0_2 = arith.constant 0 : index
      %6 = vector.load %arg9[%c0, %c0_2] : memref<1x32xf32, #tpu.memory_space<vmem>>, vector<1x32xf32>
      %cst = arith.constant 9.99999974E-5 : f32
      %7 = vector.broadcast %cst : f32 to vector<1x32xf32>
      %8 = arith.addf %6, %7 : vector<1x32xf32>
      %cst_3 = arith.constant 1.000000e+00 : f32
      %9 = vector.broadcast %cst_3 : f32 to vector<1x32xf32>
      %10 = arith.divf %9, %8 : vector<1x32xf32>
      %11 = arith.index_cast %arg1 : i32 to index
      %c0_4 = arith.constant 0 : index
      %c0_5 = arith.constant 0 : index
      %12 = vector.load %arg10[%11, %c0_4, %c0_5] : memref<2x8x32xf32, #tpu.memory_space<vmem>>, vector<1x8x32xf32>
      %13 = vector.shape_cast %12 : vector<1x8x32xf32> to vector<8x32xf32>
      %c0_6 = arith.constant 0 : index
      %c0_7 = arith.constant 0 : index
      %14 = vector.load %arg8[%c0_6, %c0_7] : memref<1x32xf32, #tpu.memory_space<vmem>>, vector<1x32xf32>
      %15 = vector.broadcast %14 : vector<1x32xf32> to vector<8x32xf32>
      %16 = arith.subf %13, %15 : vector<8x32xf32>
      %17 = vector.broadcast %10 : vector<1x32xf32> to vector<8x32xf32>
      %18 = arith.mulf %16, %17 : vector<8x32xf32>
      %c0_8 = arith.constant 0 : index
      %c0_9 = arith.constant 0 : index
      %19 = vector.load %arg7[%c0_8, %c0_9] : memref<8x32xf32, #tpu.memory_space<vmem>>, vector<8x32xf32>
      tpu.vector_store %arg7[%c0_8, %c0_9], %18 {strides = array<i32>} : memref<8x32xf32, #tpu.memory_space<vmem>>, vector<8x32xf32>,
    } else {
    }
    return
  }
  func.func @transform_0(%arg0: i32, %arg1: i32) -> (i32, i32) {
    %c1_i32 = arith.constant 1 : i32
    %0 = arith.subi %c1_i32, %arg0 : i32
    %1 = arith.muli %0, %arg1 : i32
    %c0_i32 = arith.constant 0 : i32
    %c0_i32_0 = arith.constant 0 : i32
    return %1, %c0_i32 : i32, i32
  }
  func.func @transform_1(%arg0: i32, %arg1: i32) -> (i32, i32) {
    %c0_i32 = arith.constant 0 : i32
    %c0_i32_0 = arith.constant 0 : i32
    %c0_i32_1 = arith.constant 0 : i32
    return %c0_i32, %c0_i32_0 : i32, i32
  }
  func.func @transform_2(%arg0: i32, %arg1: i32) -> (i32, i32) {
    %c0_i32 = arith.constant 0 : i32
    %c0_i32_0 = arith.constant 0 : i32
    %c0_i32_1 = arith.constant 0 : i32
    return %c0_i32, %c0_i32_0 : i32, i32
  }
  func.func @transform_3(%arg0: i32, %arg1: i32) -> (i32, i32) {
    %c0_i32 = arith.constant 0 : i32
    %c0_i32_0 = arith.constant 0 : i32
    %c0_i32_1 = arith.constant 0 : i32
    return %c0_i32, %c0_i32_0 : i32, i32
  }
  func.func @transform_4(%arg0: i32, %arg1: i32) -> (i32, i32) {
    %c0_i32 = arith.constant 0 : i32
    %c0_i32_0 = arith.constant 0 : i32
    %c0_i32_1 = arith.constant 0 : i32
    return %c0_i32, %c0_i32_0 : i32, i32
  }
  func.func @transform_5(%arg0: i32, %arg1: i32) -> (i32, i32) {
    %0 = arith.muli %arg0, %arg1 : i32
    %c0_i32 = arith.constant 0 : i32
    %c0_i32_0 = arith.constant 0 : i32
    return %0, %c0_i32 : i32, i32
  }
  func.func @transform_6(%arg0: i32, %arg1: i32) -> (i32, i32) {
    %c0_i32 = arith.constant 0 : i32
    %c0_i32_0 = arith.constant 0 : i32
    %c0_i32_1 = arith.constant 0 : i32
    return %c0_i32, %c0_i32_0 : i32, i32
  }
  func.func @transform_7(%arg0: i32, %arg1: i32) -> (i32, i32) {
    %c0_i32 = arith.constant 0 : i32
    %c0_i32_0 = arith.constant 0 : i32
    %c0_i32_1 = arith.constant 0 : i32
    return %c0_i32, %c0_i32_0 : i32, i32
  }
}

</mosaic_0001>

<bundles_post_ra>
// kernel: tpu_custom_call.1
= control target key start
LH: loop header
LB: loop body
LE: loop exit
PB: predicated region body
PF: predicated region fallthrough
CT: control target
= control target key end

     0   :  { %s1768_s0 = inlined_call_operand.hbm [shape: f32[16,32], index: 0, kind: input, shape index: {}]   ;;  %s1769_s1 = inlined_call_operand.hbm [shape: f32[32,32], index: 1, kind: input, shape index: {}]   ;;  %s1770_s2 = inlined_call_operand.hbm [shape: f32[1,32], index: 2, kind: input, shape index: {}]   ;;  %s1771_s3 = inlined_call_operand.hbm [shape: f32[1,32], index: 3, kind: input, shape index: {}]   ;;  %s1772_s4 = inlined_call_operand.hbm [shape: f32[1,32], index: 4, kind: input, shape index: {}]   ;;  %s1773_s5 = inlined_call_operand.hbm [shape: f32[16,32], index: 5, kind: output, shape index: {0}]   ;;  %s1774_s6 = inlined_call_operand.hbm [shape: f32[1,32], index: 6, kind: output, shape index: {1}]   ;;  %s1775_s7 = inlined_call_operand.hbm [shape: f32[1,32], index: 7, kind: output, shape index: {2}]  }
   0x1   :  { %1789 = sst [smem:[#allocation26_spill]] %s1768_s0 }
   0x2   :  { %1790 = sst [smem:[#allocation27_spill]] %s1769_s1 }
   0x3   :  { %1791 = sst [smem:[#allocation28_spill]] %s1770_s2 }
   0x4   :  { %1792 = sst [smem:[#allocation29_spill]] %s1771_s3 }
   0x5   :  { %1793 = sst [smem:[#allocation30_spill]] %s1772_s4 }
   0x6   :  { %1794 = sst [smem:[#allocation31_spill]] %s1773_s5 }
   0x7   :  { %1795 = sst [smem:[#allocation32_spill]] %s1774_s6 }
   0x8   :  { %1796 = sst [smem:[#allocation33_spill]] %s1775_s7 }
   0x9   :  { %13 = vsyncpa [#allocation6], 0 }
   0xa   :  { %15 = vsyncpa [#allocation6 + $0x1], 0 }
   0xb   :  { %16 = vsyncpa [#allocation9], 0 }
   0xc   :  { %17 = vsyncpa [#allocation12], 0 }
   0xd   :  { %18 = vsyncpa [#allocation7], 0 }
   0xe   :  { %20 = vsyncpa [#allocation7 + $0x1], 0 }
   0xf   :  { %21 = vsyncpa [#allocation16], 0  ;;  %s1343_s24 = smov 0   ;;  %s1345_s25 = smov 0  }
  0x10   :  { %s1347_s26 = smov 0   ;;  %s1349_s27 = smov 0  }
  0x11   :  { %s1351_s28 = smov 0   ;;  %s1353_s29 = smov 0  }
  0x12   :  { %s1355_s30 = smov 0   ;;  %s1357_s8 = smov 0  }
  0x13   :  { %s1359_s9 = smov 0   ;;  %s1361_s10 = smov 0  }
  0x14   :  { %s1363_s11 = smov 0  }
  0x15 LB: > { %1797 = sst [smem:[#allocation23_spill]] %s1271_s30  ;;  %s732_s12 = sadd.s32 4294967295, %s1287_s11   ;;  %s1287_s11 = sphi %s1363_s11, %s27_s11   ;;  %s1283_s10 = sphi %s1361_s10, %s1844_s10   ;;  %s1279_s9 = sphi %s1359_s9, %s1843_s9   ;;  %s1275_s8 = sphi %s1357_s8, %s1842_s8   ;;  %s1271_s30 = sphi %s1355_s30, %s1841_s30   ;;  %s1267_s29 = sphi %s1353_s29, %s1840_s29   ;;  %s1263_s28 = sphi %s1351_s28, %s1839_s28   ;;  %s1259_s27 = sphi %s1349_s27, %s1838_s27   ;;  %s1255_s26 = sphi %s1347_s26, %s1837_s26   ;;  %s1251_s25 = sphi %s1345_s25, %s1836_s25   ;;  %s1247_s24 = sphi %s1343_s24, %s1835_s24  }
  0x16   : > { %1798 = sst [smem:[#allocation24_spill]] %s1275_s8  ;;  %p734_p0 = scmp.ge.s32.totalorder %s1287_s11, 1 }
  0x17   : > { %p1400_p1 = scmp.eq.s32.totalorder %s732_s12, 0  ;;  %p1404_p2 = scmp.eq.s32.totalorder %s732_s12, 3 }
  0x18   : > { %p228_p3 = scmp.lt.s32.totalorder %s1287_s11, 5  ;;  %s1289_s16 = smov [#allocation8]  }
  0x19   : > { %s1799_s13 = scalar_select %p1400_p1, 1, 0 }
  0x1a   : > { %s1800_s14 = scalar_select %p1404_p2, 1, 0 }
  0x1b   : > { %p1409_p4 = pnand %p734_p0, %p228_p3  ;;  %s240_s17 = sshll.u32 %s1289_s16, 4  ;;  %s1413_s17 = int_to_ptr.vmem [resolvable:$true] %s240_s17 }
  0x1c   : > { %s1290_s19 = smov [#allocation11]   ;;  %s1291_s21 = smov [#allocation10]  }
  0x1d   : > { %s1801_s15 = scalar_select %p1409_p4, 1, 0 }
  0x1e   : > { %p822_p5 = pneg %p1409_p4  ;;  %s265_s20 = sshll.u32 %s1290_s19, 4  ;;  %s1423_s20 = int_to_ptr.vmem [resolvable:$true] %s265_s20 }
  0x1f   : > { %1802 = sst [smem:[#allocation25_spill]] %s1801_s15  ;;  %s254_s22 = sshll.u32 %s1291_s21, 4  ;;  %s1425_s22 = int_to_ptr.vmem [resolvable:$true] %s254_s22 }
  0x20   : > { %p1419_p6 = pnand %p822_p5, %p1400_p1  ;;  %s1804_s1 = sld [smem:[#allocation27_spill]] }
  0x22   : > { %p1435_p8 = pneg %p1419_p6 }
  0x26   : > { %s959_s16 = scalar_lea.hbm %s1804_s1, 512 }
  0x27   : > { %p960_p7 = scmp.ne.s32.totalorder %s1804_s1, %s959_s16  ;;  %p966_p11 = scmp.lt.u32.totalorder %s959_s16, %s1804_s1 }
  0x29   : > { %p962_p9 = pnand %p1435_p8, %p960_p7 }
  0x2b   : > { %p963_p10 = pneg %p962_p9 }
  0x2d   : > { %p968_p12 = pnand %p966_p11, %p963_p10 }
  0x2f   : > { %971 = shalt.err (!%p968_p12)
}
  0x30   : > { %s972_s5 = scalar_lea.vmem %s1413_s17, 512  ;;  %p980_p5 = scmp.lt.s32.totalorder %s1413_s17, %s1413_s17 }
  0x31   : > { %p973_p13 = scmp.ne.s32.totalorder %s1413_s17, %s972_s5  ;;  %p981_p4 = scmp.lt.s32.totalorder %s972_s5, %s972_s5 }
  0x33   : > { %p975_p0 = pnand %p973_p13, %p1435_p8  ;;  %p982_p7 = por %p981_p4, %p980_p5 }
  0x35   : > { %p976_p3 = pneg %p975_p0 }
  0x37   : > { %p983_p9 = pnand %p982_p7, %p976_p3 }
  0x39   : > { %986 = shalt.err (!%p983_p9)
}
  0x3a   : > { %s1292_s7 = smov 128   ;;  %s1293_s23 = smov 8  }
  0x3b   : > { %825 = dma.hbm_to_vmem [thread:$0]  (!%p1419_p6), %s1804_s1, 512, %s1413_s17, [#allocation9], %s1292_s7, %s1292_s7, %s1293_s23  }
  0x3c   : > { %s1806_s3 = sld [smem:[#allocation29_spill]] }
  0x42   : > { %s987_s30 = scalar_lea.hbm %s1806_s3, 16 }
  0x43   : > { %p988_p4 = scmp.ne.s32.totalorder %s1806_s3, %s987_s30  ;;  %p994_p12 = scmp.lt.u32.totalorder %s987_s30, %s1806_s3 }
  0x45   : > { %p990_p10 = pnand %p988_p4, %p1435_p8 }
  0x47   : > { %p991_p11 = pneg %p990_p10 }
  0x49   : > { %p996_p13 = pnand %p994_p12, %p991_p11 }
  0x4b   : > { %999 = shalt.err (!%p996_p13)
}
  0x4c   : > { %s1000_s17 = scalar_lea.vmem %s1423_s20, 16  ;;  %s1007_s8 = scalar_lea.vmem %s1423_s20, 32 }
  0x4d   : > { %p1001_p0 = scmp.ne.s32.totalorder %s1423_s20, %s1000_s17  ;;  %p1008_p7 = scmp.lt.s32.totalorder %s1423_s20, %s1423_s20 }
  0x4e   : > { %p1009_p9 = scmp.lt.s32.totalorder %s1007_s8, %s1000_s17 }
  0x4f   : > { %p1003_p3 = pnand %p1001_p0, %p1435_p8 }
  0x50   : > { %p1010_p4 = por %p1009_p9, %p1008_p7 }
  0x51   : > { %p1004_p5 = pneg %p1003_p3 }
  0x53   : > { %p1011_p10 = pnand %p1010_p4, %p1004_p5 }
  0x55   : > { %1014 = shalt.err (!%p1011_p10)
}
  0x56   : > { %831 = dma.hbm_to_vmem [thread:$0]  (!%p1419_p6), %s1806_s3, 16, %s1423_s20, [#allocation12]  }
  0x57   : > { %s1807_s2 = sld [smem:[#allocation28_spill]] }
  0x5d   : > { %s1015_s23 = scalar_lea.hbm %s1807_s2, 16 }
  0x5e   : > { %p1016_p11 = scmp.ne.s32.totalorder %s1807_s2, %s1015_s23  ;;  %p1022_p0 = scmp.lt.u32.totalorder %s1015_s23, %s1807_s2 }
  0x60   : > { %p1018_p12 = pnand %p1016_p11, %p1435_p8 }
  0x62   : > { %p1019_p13 = pneg %p1018_p12 }
  0x64   : > { %p1024_p3 = pnand %p1022_p0, %p1019_p13 }
  0x66   : > { %1027 = shalt.err (!%p1024_p3)
}
  0x67   : > { %s1028_s20 = scalar_lea.vmem %s1425_s22, 16  ;;  %s1035_s5 = scalar_lea.vmem %s1425_s22, 32 }
  0x68   : > { %p1029_p5 = scmp.ne.s32.totalorder %s1425_s22, %s1028_s20  ;;  %p1036_p4 = scmp.lt.s32.totalorder %s1425_s22, %s1425_s22 }
  0x69   : > { %p1037_p10 = scmp.lt.s32.totalorder %s1035_s5, %s1028_s20 }
  0x6a   : > { %p1031_p7 = pnand %p1029_p5, %p1435_p8 }
  0x6b   : > { %p1038_p11 = por %p1037_p10, %p1036_p4 }
  0x6c   : > { %p1032_p9 = pneg %p1031_p7 }
  0x6e   : > { %p1039_p12 = pnand %p1038_p11, %p1032_p9 }
  0x70   : > { %1042 = shalt.err (!%p1039_p12)
}
  0x71   : > { %828 = dma.hbm_to_vmem [thread:$0]  (!%p1419_p6), %s1807_s2, 16, %s1425_s22, [#allocation9]  }
  0x72   : > { %s1294_s0 = smov [#allocation13]   ;;  %s1808_s4 = sld [smem:[#allocation30_spill]] }
  0x73   : > { %s276_s30 = sshll.u32 %s1294_s0, 4  ;;  %s277_s30 = int_to_ptr.vmem [resolvable:$true] %s276_s30 }
  0x78   : > { %s1043_s23 = scalar_lea.hbm %s1808_s4, 16 }
  0x79   : > { %p1044_p13 = scmp.ne.s32.totalorder %s1808_s4, %s1043_s23  ;;  %p1050_p5 = scmp.lt.u32.totalorder %s1043_s23, %s1808_s4 }
  0x7b   : > { %p1046_p0 = pnand %p1044_p13, %p1435_p8 }
  0x7d   : > { %p1047_p3 = pneg %p1046_p0 }
  0x7f   : > { %p1052_p7 = pnand %p1050_p5, %p1047_p3 }
  0x81   : > { %1055 = shalt.err (!%p1052_p7)
}
  0x82   : > { %s1056_s22 = scalar_lea.vmem %s277_s30, 16  ;;  %s1063_s20 = scalar_lea.vmem %s277_s30, 32 }
  0x83   : > { %p1057_p9 = scmp.ne.s32.totalorder %s277_s30, %s1056_s22  ;;  %p1064_p11 = scmp.lt.s32.totalorder %s277_s30, %s277_s30 }
  0x84   : > { %p1065_p12 = scmp.lt.s32.totalorder %s1063_s20, %s1056_s22 }
  0x85   : > { %p1059_p4 = pnand %p1057_p9, %p1435_p8 }
  0x86   : > { %p1066_p2 = por %p1065_p12, %p1064_p11 }
  0x87   : > { %p1060_p10 = pneg %p1059_p4 }
  0x89   : > { %p1067_p1 = pnand %p1066_p2, %p1060_p10 }
  0x8b   : > { %1070 = shalt.err (!%p1067_p1)
}
  0x8c   : > { %834 = dma.hbm_to_vmem [thread:$0]  (!%p1419_p6), %s1808_s4, 16, %s277_s30, [#allocation12]  }
  0x8d   : > { %s733_s6 = sadd.s32 4294967294, %s1287_s11   ;;  %s36_s18 = sadd.s32 1, %s1279_s9 }
  0x8e   : > { %s39_s8 = sadd.s32 1, %s1283_s10  ;;  %p37_p1 = scmp.ge.s32.totalorder %s36_s18, 2 }
  0x8f   : > { %s43_s0 = ssub.s32 1, %s1283_s10  ;;  %s50_s7 = sadd.s32 1, %s1267_s29 }
  0x90   : > { %s1527_s15 = smul.u32 %s1279_s9, %s43_s0  ;;  %s1846_s18 = smov (%p37_p1, %s36_s18), 0 }
  0x91   : > { %s1848_s8 = smov (!%p37_p1, %s39_s8), %s1283_s10  ;;  %p57_p2 = scmp.ne.s32.totalorder %s1267_s29, %s1263_s28 }
  0x92   : > { %p58_p6 = scmp.eq.s32.totalorder %s1287_s11, 0  ;;  %p41_p8 = scmp.ge.s32.totalorder %s1848_s8, 2 }
  0x93   : > { %p63_p13 = scmp.ne.s32.totalorder %s1263_s28, %s1259_s27  ;;  %s157_s23 = smul.u32 %s1279_s9, %s1283_s10 }
  0x94   : > { %p1538_p0 = por %p58_p6, %p57_p2  ;;  %s1850_s8 = smov (%p41_p8, %s1848_s8), 0 }
  0x95   : > { %p1810_p3 = scmp.ne.s32.totalorder %s1799_s13, 0  ;;  %s162_s27 = sadd.s32 1, %s1255_s26 }
  0x96   : > { %s45_s16 = ssub.s32 1, %s1850_s8  ;;  %s158_s19 = smul.u32 %s1850_s8, %s1846_s18 }
  0x97   : > { %p1548_p5 = por %p1810_p3, %p63_p13  ;;  %s46_s21 = smul.u32 %s45_s16, %s1846_s18 }
  0x98   : > { %p172_p7 = scmp.ne.s32.totalorder %s1255_s26, %s1251_s25  ;;  %s159_s22 = ssub.s32 %s157_s23, %s158_s19 }
  0x99   : > { %p178_p9 = scmp.ne.s32.totalorder %s1251_s25, %s1247_s24  ;;  %s47_s20 = ssub.s32 %s1527_s15, %s46_s21 }
  0x9a   : > { %p160_p4 = scmp.eq.s32.totalorder %s159_s22, 0  ;;  %p48_p10 = scmp.eq.s32.totalorder %s47_s20, 0 }
  0x9b   : > { %p1812_p11 = scmp.ne.s32.totalorder %s1800_s14, 0  ;;  %p179_p1 = scmp.eq.s32.totalorder %s733_s6, 3 }
  0x9c   : > { %s1569_s17 = scalar_select %p160_p4, %s1255_s26, %s162_s27  }
  0x9d   : > { %p1564_p12 = por %p1812_p11, %p172_p7  ;;  %p847_p2 = scmp.lt.s32.totalorder %s1287_s11, 4 }
  0x9e   : > { %s1572_s0 = scalar_select %p48_p10, %s1267_s29, %s50_s7  }
  0x9f   : > { %s1813_s5 = scalar_select %p1564_p12, 1, 0 }
  0xa0   : > { %s287_s16 = sand.u32 1, %s1267_s29   ;;  %s741_s1 = sshll.u32 %s1527_s15, 7 }
  0xa1   : > { %p1579_p6 = por %p179_p1, %p178_p9  ;;  %s740_s19 = sshll.u32 %s287_s16, 3 }
  0xa2   : > { %s1815_s20 = sld [smem:[#allocation26_spill]]  ;;  %p1590_p8 = pnand %p847_p2, %p1538_p0 }
  0xa3   : > { %s1814_s23 = scalar_select %p1579_p6, 1, 0 }
  0xa4   : > { %s291_s15 = scalar_lea.vmem [#allocation5], %s740_s19  ;;  %s288_s27 = scalar_lea.sflag [#allocation6], %s287_s16 }
  0xa5   : > { %s300_s7 = sshll.u32 %s291_s15, 4  ;;  %p1073_p3 = pneg %p1590_p8  ;;  %s1594_s7 = int_to_ptr.vmem [resolvable:$true] %s300_s7 }
  0xa8   : > { %s1586_s2 = scalar_lea.hbm %s1815_s20, %s741_s1  ;;  %s1076_s21 = scalar_lea.hbm %s1815_s20, 256 }
  0xa9   : > { %s1071_s3 = scalar_lea.hbm %s1586_s2, 128  ;;  %p1077_p0 = scmp.lt.u32.totalorder %s1586_s2, %s1815_s20 }
  0xaa   : > { %p1072_p13 = scmp.ne.s32.totalorder %s1586_s2, %s1071_s3  ;;  %p1078_p4 = scmp.lt.u32.totalorder %s1076_s21, %s1071_s3 }
  0xab   : > { %p1080_p11 = scmp.lt.u32.totalorder %s1071_s3, %s1586_s2 }
  0xac   : > { %p1074_p7 = pnand %p1073_p3, %p1072_p13  ;;  %p1079_p10 = por %p1078_p4, %p1077_p0 }
  0xae   : > { %p1075_p9 = pneg %p1074_p7  ;;  %p1081_p1 = por %p1080_p11, %p1079_p10 }
  0xb0   : > { %p1082_p2 = pnand %p1081_p1, %p1075_p9 }
  0xb2   : > { %1085 = shalt.err (!%p1082_p2)
}
  0xb3   : > { %s1086_s16 = scalar_lea.vmem %s1594_s7, 128  ;;  %s1295_s19 = smov [#allocation5]  }
  0xb4   : > { %p1087_p13 = scmp.ne.s32.totalorder %s1594_s7, %s1086_s16  ;;  %s1091_s15 = sshll.u32 %s1295_s19, 4  ;;  %s1092_s15 = int_to_ptr.vmem [resolvable:$false] %s1091_s15 }
  0xb5   : > { %s1093_s4 = scalar_lea.vmem %s1092_s15, 256  ;;  %p1094_p12 = scmp.lt.s32.totalorder %s1594_s7, %s1092_s15 }
  0xb6   : > { %p1089_p7 = pnand %p1087_p13, %p1073_p3  ;;  %p1095_p0 = scmp.lt.s32.totalorder %s1093_s4, %s1086_s16 }
  0xb8   : > { %p1090_p6 = pneg %p1089_p7  ;;  %p1096_p4 = por %p1095_p0, %p1094_p12 }
  0xba   : > { %p1097_p10 = pnand %p1096_p4, %p1090_p6 }
  0xbc   : > { %1100 = shalt.err (!%p1097_p10)
}
  0xbd   : > { %838 = dma.hbm_to_vmem [thread:$0]  (!%p1590_p8), %s1586_s2, 128, %s1594_s7, %s288_s27  }
  0xbe   : > { %s1817_s3 = sld [smem:[#allocation25_spill]] }
  0xc4   : > { %p1818_p9 = scmp.ne.s32.totalorder %s1817_s3, 0 }
  0xc5   : > { %s311_s1 = sand.u32 (!%p1818_p9), 1, %s1263_s28  }
  0xc6   : > { %309 = sbr.rel (%p1818_p9) target bundleno = 614 (0x266), region = 40  ;;  %s1624_s30 = sshll.u32 (!%p1818_p9), %s311_s1, 3 }
  0xc7   : > { %s312_s21 = scalar_lea.sflag (!%p1818_p9), [#allocation6], %s311_s1  ;;  %s315_s22 = scalar_lea.vmem (!%p1818_p9), [#allocation5], %s1624_s30 }
  0xcd   : > { %1226 = dma.done.wait (%p1548_p5), %s312_s21, 128  }
  0xce   : > { %1228 = vsyncadd (%p1548_p5), %s312_s21, 4294967168  ;;  %p1819_p12 = scmp.ne.s32.totalorder %s1799_s13, 0 }
  0xd0   : > { %1230 = dma.done.wait (%p1819_p12), [#allocation9], 528  }
  0xd1   : > { %1232 = vsyncadd (%p1819_p12), [#allocation9], 4294966768 }
  0xd2   : > { %1234 = dma.done.wait (%p1819_p12), [#allocation12], 32  }
  0xd3   : > { %1236 = vsyncadd (%p1819_p12), [#allocation12], 4294967264  ;;  %s1787_s2 = sand.u32 1, %s1251_s25   ;;  %s1820_s7 = sld [smem:[#allocation24_spill]] }
  0xd4   : > { %s1642_s6 = sshll.u32 %s1787_s2, 3 }
  0xd5   : > { %s357_s12 = scalar_lea.vmem [#allocation14], %s1642_s6 }
  0xd9   : > { %p749_p5 = scmp.ne.s32.totalorder %s1820_s7, 0 }
  0xda   : > { %s1821_s27 = sld [smem:[#allocation23_spill]] (!%p749_p5) }
  0xdb   : > { %368 = sbr.rel (%p749_p5) target bundleno = 501 (0x1f5), region = 64 }
  0xe0   : > { %p750_p6 = scmp.ne.s32.totalorder (!%p749_p5), %s1821_s27, 0 }
  0xe2   : > { %372 = sbr.rel (%p750_p6) target bundleno = 233 (0xe9), region = 68  ;;  %vm373_vm0 = vcmask (!%p750_p6), 261120   ;;  %v1296_v0 = vmov (!%p750_p6), 0.0  }
  0xe3   : > { %374 = vst.msk [vmem:[#allocation3] sm:$0xff] (!%p750_p6), %vm373_vm0, %v1296_v0  ;;  %375 = vst.msk [vmem:[#allocation4] sm:$0xff] (!%p750_p6), %vm373_vm0, %v1296_v0 }
  0xe9 PF: > { %v377_v1 = vld [vmem:[#allocation8] sm:$0xff]  ;;  %v378_v2 = vld [vmem:[#allocation8 + $0x8] sm:$0xff]  ;;  %vm388_vm1 = vcmask 261120   ;;  %s1822_s13 = sld [smem:[#allocation23_spill]]  ;;  %v1297_v3 = vmov 0.0|0.0   ;;  %vm1298_vm3 = vmmov 0  }
  0xea   : > { %786 = vmatprep.subr.bf16.mxu0 %v1297_v3  ;;  %v787_v4 = vpack.c.bf16 %v378_v2, %v377_v1  ;;  %vm788_vm2 = vmpackc.low %vm388_vm1, %vm388_vm1  ;;  %v1299_v5 = vmov 0.0   ;;  %v379_v6 = vld [vmem:[#allocation8 + $0x10] sm:$0xff]  ;;  %v380_v7 = vld [vmem:[#allocation8 + $0x18] sm:$0xff] }
  0xeb   : > { %783 = vmatprep.mubr.msk.f32.mxu0 %vm1298_vm3, %v1299_v5  ;;  %v791_v8 = vpack.c.bf16 %v380_v7, %v379_v6  ;;  %v376_v9 = vld [vmem:[%s315_s22] sm:$0xff]  ;;  %v751_v10 = vld [vmem:[#allocation10] ss:$0 sm:$0xff]  ;;  %v481_v15 = vld [vmem:[#allocation4] sm:$0xff] }
  0xec   : > { %789 = vmatpush3.bf16.xpose.msk.msra.mxu0 %vm788_vm2, %v787_v4  ;;  %v477_v12 = vld [vmem:[#allocation3] sm:$0xff] }
  0xed   : > { %790 = vmatprep.subr.bf16.mxu0 %v1297_v3 }
  0xef   : > { %s757_s16 = sshll.u32 %s1822_s13, 3  ;;  %p758_p8 = scmp.ne.s32.totalorder %s1822_s13, 1 }
  0xf0   : > { %s475_s19 = scalar_lea.vmem [#allocation2], %s757_s16  ;;  %v513_v33 = vld [vmem:[#allocation11] sm:$0x1] (!%p758_p8)  ;;  %vm516_vm4 = vcmask (!%p758_p8), 253952   ;;  %v519_v40 = vld [vmem:[#allocation13] sm:$0x1] (!%p758_p8) }
  0xf1   : > { %v514_v36 = vmul.f32 (!%p758_p8), 0.99, %v513_v33  ;;  %v520_v44 = vmul.f32 (!%p758_p8), 0.99, %v519_v40 }
  0xf4   : > { %793 = vmatpush3.bf16.xpose.msk.msra.mxu0 %vm788_vm2, %v791_v8 }
  0xfb   : > { %784 = vmatmul.mubr.msk.f32.vlgmr.msra.gmra.mrb[0].mxu0 %vm388_vm1, %v376_v9 }
 0x1ce   : > { %v470_v11 = vpop.f32.mrb[0].mxu0 }
 0x1cf   : > { %v471_v13 = vadd.f32 %v751_v10, %v470_v11  ;;  %v785_v14 = vpop.f32.mrb[1].mxu0  ;;  %489 = sbr.rel (%p758_p8) target bundleno = 501 (0x1f5), region = 72 }
 0x1d1   : > { %476 = vst.msk [vmem:[%s475_s19] sm:$0xff] %vm388_vm1, %v471_v13  ;;  %v479_v16 = vadd.f32 %v477_v12, %v471_v13  ;;  %v482_v17 = vmul.f32 %v471_v13, %v471_v13 }
 0x1d3   : > { %480 = vst.msk [vmem:[#allocation3] sm:$0xff] %vm388_vm1, %v479_v16  ;;  %v484_v18 = vadd.f32 %v482_v17, %v481_v15 }
 0x1d5   : > { %485 = vst.msk [vmem:[#allocation4] sm:$0xff] %vm388_vm1, %v484_v18 }
 0x1da   : > { %v490_v19 = vld [vmem:[#allocation3] sm:$0xff] }
 0x1db   : > { %v491_v21 = vsel %vm388_vm1, %v490_v19, 0.0 }
 0x1dc   : > { %v498_v20 = vld [vmem:[#allocation4] sm:$0xff]  ;;  %v492_v23 = vrot.slane %v491_v21, 4 }
 0x1dd   : > { %v499_v22 = vsel %vm388_vm1, %v498_v20, 0.0 }
 0x1de   : > { %v500_v24 = vrot.slane %v499_v22, 4  ;;  %v493_v25 = vadd.f32 %v492_v23, %v491_v21 }
 0x1e0   : > { %v501_v26 = vadd.f32 %v500_v24, %v499_v22  ;;  %v494_v27 = vrot.slane %v493_v25, 2 }
 0x1e2   : > { %v502_v28 = vrot.slane %v501_v26, 2  ;;  %v495_v29 = vadd.f32 %v494_v27, %v493_v25 }
 0x1e4   : > { %v503_v30 = vadd.f32 %v502_v28, %v501_v26  ;;  %v496_v31 = vrot.slane %v495_v29, 1 }
 0x1e6   : > { %v504_v32 = vrot.slane %v503_v30, 1  ;;  %v497_v34 = vadd.f32 %v496_v31, %v495_v29 }
 0x1e8   : > { %v507_v35 = vmul.f32 0.0625, %v497_v34  ;;  %v505_v37 = vadd.f32 %v504_v32, %v503_v30 }
 0x1ea   : > { %v512_v38 = vmul.f32 0.01, %v507_v35  ;;  %v508_v39 = vmul.f32 %v507_v35, %v497_v34 }
 0x1ec   : > { %v515_v41 = vadd.f32 %v514_v36, %v512_v38  ;;  %v509_v42 = vsub.f32 %v505_v37, %v508_v39 }
 0x1ee   : > { %517 = vst.msk [vmem:[#allocation15] sm:$0x1] %vm516_vm4, %v515_v41  ;;  %v511_v43 = vmul.f32 0.06666667, %v509_v42 }
 0x1f0   : > { %v518_v45 = vmul.f32 0.01, %v511_v43 }
 0x1f2   : > { %v521_v46 = vadd.f32 %v520_v44, %v518_v45 }
 0x1f4   : > { %522 = vst.msk [vmem:[#allocation17] sm:$0x1] %vm516_vm4, %v521_v46 }
 0x1f5 PF: > { %s1823_s15 = sld [smem:[#allocation24_spill]] }
 0x1fb   : > { %p759_p3 = scmp.ne.s32.totalorder %s1823_s15, 1 }
 0x1fc   : > { %v527_v47 = vld [vmem:[#allocation17] sm:$0x1] (!%p759_p3)  ;;  %s1824_s4 = sld [smem:[#allocation23_spill]] (!%p759_p3)  ;;  %v543_v49 = vlaneseq (!%p759_p3)  ;;  %v761_v52 = vld [vmem:[#allocation15] ss:$0 sm:$0xff] (!%p759_p3)  ;;  %vm549_vm5 = vcmask (!%p759_p3), 261120  }
 0x1fd   : > { %526 = sbr.rel (%p759_p3) target bundleno = 527 (0x20f), region = 76  ;;  %v528_v48 = vadd.f32 (!%p759_p3), 0.0001, %v527_v47 }
 0x1fe   : > { %v544_v50 = vshrl.u32 (!%p759_p3), %v543_v49, 7 }
 0x1ff   : > { %957 = vrcp.f32 (!%p759_p3), %v528_v48 }
 0x200   : > { %v545_v53 = vsub.s32 (!%p759_p3), 0, %v544_v50 }
 0x202   : > { %s760_s3 = sshll.u32 (!%p759_p3), %s1824_s4, 3 }
 0x203   : > { %s532_s1 = scalar_lea.vmem (!%p759_p3), [#allocation2], %s760_s3 }
 0x204   : > { %v533_v51 = vld [vmem:[%s532_s1] sm:$0xff] }
 0x205   : > { %v541_v54 = vsub.f32 %v533_v51, %v761_v52 }
 0x209   : > { %v958_v55 = vpop.eup %957 }
 0x20a   : > { %v546_v56 = vrot.slane %v958_v55, %v545_v53 }
 0x20c   : > { %v548_v57 = vmul.f32 %v546_v56, %v541_v54 }
 0x20e   : > { %550 = vst.msk [vmem:[%s357_s12] sm:$0xff] %vm549_vm5, %v548_v57 }
 0x20f PF: > { %s1300_s30 = smov [#allocation15]   ;;  %s1825_s21 = sld [smem:[#allocation24_spill]] }
 0x210   : > { %s1826_s22 = sld [smem:[#allocation23_spill]]  ;;  %s577_s7 = sshll.u32 %s1300_s30, 4  ;;  %s578_s7 = int_to_ptr.vmem [resolvable:$true] %s577_s7 }
 0x211   : > { %s1101_s13 = scalar_lea.vmem %s578_s7, 16  ;;  %p1827_p1 = scmp.ne.s32.totalorder %s1800_s14, 0 }
 0x212   : > { %p1102_p11 = scmp.ne.s32.totalorder %s578_s7, %s1101_s13  ;;  %s1107_s16 = scalar_lea.vmem %s578_s7, 32 }
 0x213   : > { %p1108_p7 = scmp.lt.s32.totalorder %s578_s7, %s578_s7  ;;  %p1109_p0 = scmp.lt.s32.totalorder %s1107_s16, %s1101_s13 }
 0x214   : > { %p1103_p2 = pnand %p1102_p11, %p1827_p1 }
 0x215   : > { %p1110_p4 = por %p1109_p0, %p1108_p7 }
 0x216   : > { %s559_s27 = smul.u32 %s1826_s22, %s1825_s21  ;;  %p1104_p13 = pneg %p1103_p2 }
 0x218   : > { %p1111_p10 = pnand %p1110_p4, %p1104_p13 }
 0x21a   : > { %1114 = shalt.err (!%p1111_p10)
}
 0x21b   : > { %s1828_s4 = sld [smem:[#allocation32_spill]] }
 0x221   : > { %s1115_s3 = scalar_lea.hbm %s1828_s4, 16 }
 0x222   : > { %p1116_p9 = scmp.ne.s32.totalorder %s1828_s4, %s1115_s3  ;;  %p1121_p6 = scmp.lt.u32.totalorder %s1115_s3, %s1828_s4 }
 0x224   : > { %p1117_p12 = pnand %p1116_p9, %p1827_p1 }
 0x226   : > { %p1118_p5 = pneg %p1117_p12 }
 0x228   : > { %p1123_p8 = pnand %p1121_p6, %p1118_p5 }
 0x22a   : > { %1126 = shalt.err (!%p1123_p8)
}
 0x22b   : > { %814 = dma.vmem_to_hbm [thread:$0]  (%p1827_p1), %s578_s7, 16, %s1828_s4, [#allocation16]  }
 0x22c   : > { %s763_s19 = sshll.u32 %s559_s27, 7  ;;  %s566_s15 = sshll.u32 %s357_s12, 4  ;;  %s567_s15 = int_to_ptr.vmem [resolvable:$true] %s566_s15 }
 0x22d   : > { %s1829_s2 = sld [smem:[#allocation31_spill]]  ;;  %s1830_s3 = sand.u32 1, %s1251_s25  }
 0x22e   : > { %s552_s21 = scalar_lea.sflag [#allocation7], %s1830_s3  ;;  %s1127_s22 = scalar_lea.vmem %s567_s15, 128 }
 0x22f   : > { %p1128_p3 = scmp.ne.s32.totalorder %s567_s15, %s1127_s22  ;;  %p1831_p11 = scmp.ne.s32.totalorder %s1813_s5, 0 }
 0x230   : > { %s1301_s13 = smov [#allocation14]  }
 0x231   : > { %p1129_p2 = pnand %p1128_p3, %p1831_p11  ;;  %s1131_s16 = sshll.u32 %s1301_s13, 4  ;;  %s1132_s16 = int_to_ptr.vmem [resolvable:$false] %s1131_s16 }
 0x232   : > { %s1133_s7 = scalar_lea.vmem %s1132_s16, 256  ;;  %p1134_p7 = scmp.lt.s32.totalorder %s567_s15, %s1132_s16 }
 0x233   : > { %s1688_s20 = scalar_lea.hbm %s1829_s2, %s763_s19  ;;  %p1130_p13 = pneg %p1129_p2 }
 0x234   : > { %p1135_p0 = scmp.lt.s32.totalorder %s1133_s7, %s1127_s22 }
 0x236   : > { %p1136_p4 = por %p1135_p0, %p1134_p7 }
 0x238   : > { %p1137_p10 = pnand %p1136_p4, %p1130_p13 }
 0x23a   : > { %1140 = shalt.err (!%p1137_p10)
}
 0x23b   : > { %s1141_s6 = scalar_lea.hbm %s1688_s20, 128  ;;  %s1145_s19 = scalar_lea.hbm %s1829_s2, 256 }
 0x23c   : > { %p1142_p9 = scmp.ne.s32.totalorder %s1688_s20, %s1141_s6  ;;  %p1146_p6 = scmp.lt.u32.totalorder %s1688_s20, %s1829_s2 }
 0x23d   : > { %p1147_p8 = scmp.lt.u32.totalorder %s1145_s19, %s1141_s6  ;;  %p1149_p2 = scmp.lt.u32.totalorder %s1141_s6, %s1688_s20 }
 0x23e   : > { %p1143_p12 = pnand %p1142_p9, %p1831_p11 }
 0x23f   : > { %p1148_p3 = por %p1147_p8, %p1146_p6 }
 0x240   : > { %p1144_p5 = pneg %p1143_p12 }
 0x241   : > { %p1150_p13 = por %p1149_p2, %p1148_p3 }
 0x243   : > { %p1151_p7 = pnand %p1150_p13, %p1144_p5 }
 0x245   : > { %1154 = shalt.err (!%p1151_p7)
}
 0x246   : > { %812 = dma.vmem_to_hbm [thread:$0]  (%p1831_p11), %s567_s15, 128, %s1688_s20, %s552_s21  }
 0x247   : > { %s1302_s3 = smov [#allocation17]  }
 0x248   : > { %s588_s22 = sshll.u32 %s1302_s3, 4  ;;  %s589_s22 = int_to_ptr.vmem [resolvable:$true] %s588_s22 }
 0x249   : > { %s1155_s13 = scalar_lea.vmem %s589_s22, 16  ;;  %s1161_s16 = scalar_lea.vmem %s589_s22, 32 }
 0x24a   : > { %p1156_p0 = scmp.ne.s32.totalorder %s589_s22, %s1155_s13  ;;  %p1162_p9 = scmp.lt.s32.totalorder %s589_s22, %s589_s22 }
 0x24b   : > { %p1163_p12 = scmp.lt.s32.totalorder %s1161_s16, %s1155_s13 }
 0x24c   : > { %p1157_p4 = pnand %p1156_p0, %p1827_p1 }
 0x24d   : > { %p1164_p6 = por %p1163_p12, %p1162_p9 }
 0x24e   : > { %p1158_p10 = pneg %p1157_p4 }
 0x250   : > { %p1165_p8 = pnand %p1164_p6, %p1158_p10 }
 0x252   : > { %1168 = shalt.err (!%p1165_p8)
}
 0x253   : > { %s1832_s5 = sld [smem:[#allocation33_spill]] }
 0x259   : > { %s1169_s12 = scalar_lea.hbm %s1832_s5, 16 }
 0x25a   : > { %p1170_p11 = scmp.ne.s32.totalorder %s1832_s5, %s1169_s12  ;;  %p1175_p2 = scmp.lt.u32.totalorder %s1169_s12, %s1832_s5 }
 0x25c   : > { %p1171_p5 = pnand %p1170_p11, %p1827_p1 }
 0x25e   : > { %p1172_p3 = pneg %p1171_p5 }
 0x260   : > { %p1177_p13 = pnand %p1175_p2, %p1172_p3 }
 0x262   : > { %1180 = shalt.err (!%p1177_p13)
}
 0x263   : > { %816 = dma.vmem_to_hbm [thread:$0]  (%p1827_p1), %s589_s22, 16, %s1832_s5, [#allocation16]  }
 0x264   : > { %1238 = dma.done.wait (%p1827_p1), [#allocation16], 32  }
 0x265   : > { %1240 = vsyncadd (%p1827_p1), [#allocation16], 4294967264 }
 0x266 PF: > { %p856_p7 = scmp.ge.s32.totalorder %s1287_s11, 2  ;;  %s608_s30 = sand.u32 1, %s1247_s24  }
 0x267   : > { %p1833_p0 = scmp.ne.s32.totalorder %s1814_s23, 0  ;;  %s609_s3 = scalar_lea.sflag [#allocation7], %s608_s30 }
 0x269   : > { %p840_p4 = pnand %p856_p7, %p1833_p0 }
 0x26b   : > { %1242 = dma.done.wait (!%p840_p4), %s609_s3, 128  }
 0x26c   : > { %1244 = vsyncadd (!%p840_p4), %s609_s3, 4294967168  ;;  %s27_s11 = sadd.s32 1, %s1287_s11   ;;  %s1834_s14 = smov %s1850_s8 }
 0x26d   : > { %p24_p10 = scmp.ge.s32.totalorder %s27_s11, 6   ;;  %s1835_s24 = smov %s1251_s25 }
 0x26e   : > { %s1836_s25 = smov %s1255_s26  ;;  %s1837_s26 = smov %s1569_s17 }
 0x26f   : > { %s1838_s27 = smov %s1263_s28  ;;  %s1839_s28 = smov %s1267_s29 }
 0x270   : > { %s1840_s29 = smov %s1572_s0  ;;  %s1841_s30 = smov %s1279_s9 }
 0x271   : > { %s1842_s8 = smov %s1283_s10  ;;  %s1843_s9 = smov %s1846_s18 }
 0x272   : > { %s1844_s10 = smov %s1834_s14  ;;  %26 = sbr.rel (!%p24_p10) target bundleno = 21 (0x15), region = 135 }
 0x279   :  { %614 = vsyncpa [#allocation6], 1 }
 0x27a   :  { %616 = vsyncpa [#allocation6 + $0x1], 1 }
 0x27b   :  { %617 = vsyncpa [#allocation9], 1 }
 0x27c   :  { %618 = vsyncpa [#allocation12], 1 }
 0x27d   :  { %619 = vsyncpa [#allocation7], 1 }
 0x27e   :  { %621 = vsyncpa [#allocation7 + $0x1], 1 }
 0x27f   :  { %622 = vsyncpa [#allocation16], 1 }

</bundles_post_ra>
